<compile_context>
chip_gen: v5e
topology: v5e:2x2
jax: 0.10.0
libtpu: 0.0.40
codegen_flags: <defaults>
</compile_context>

<pallas_src>
import functools

import jax
import jax.numpy as jnp
from jax.experimental import pallas as pl
from jax.experimental.pallas import tpu as pltpu


def _round_up(x: int, m: int) -> int:
    return ((x + m - 1) // m) * m


def _cdiv(a: int, b: int) -> int:
    return (a + b - 1) // b


def _mlp_kernel(x_ref, w1_ref, b1_ref, w2_ref, b2_ref, o_ref):
    # x_ref: (TM, IN) cdt      w1_ref: (IN, H_P) cdt     b1_ref: (1, H_P) f32
    # w2_ref: (H_P, OUT_P) cdt b2_ref: (1, OUT_P) f32    o_ref: (TM, OUT_P) f32
    h = jnp.dot(x_ref[...], w1_ref[...], preferred_element_type=jnp.float32)
    h = jax.nn.sigmoid(h + b1_ref[...])                      # f32, EUP exp
    y = jnp.dot(h.astype(w2_ref.dtype), w2_ref[...],
                preferred_element_type=jnp.float32)
    o_ref[...] = (y + b2_ref[...]).astype(o_ref.dtype)


def prepare_params(w1, b1, w2, b2, compute_dtype=jnp.bfloat16):
    """Pad HID/OUT lane dims to multiples of 128 and cast ONCE (not per call).

    Zero padding keeps the math exact:
      * padded HID cols of w1/b1 -> pre-activation 0 -> sigmoid 0.5, which is
        cancelled by the matching zero padded HID rows of w2
      * padded OUT cols are sliced off by the caller.
    IN (the contraction dim of the first matmul) is left unpadded; the x block
    uses the full last dim, which is a legal BlockSpec shape.
    """
    IN, HID = w1.shape
    OUT = w2.shape[1]
    HID_P = _round_up(HID, 128)
    OUT_P = _round_up(OUT, 128)
    cdt = compute_dtype
    w1_p = jnp.zeros((IN, HID_P), cdt).at[:, :HID].set(w1.astype(cdt))
    b1_p = jnp.zeros((1, HID_P), jnp.float32).at[0, :HID].set(b1.astype(jnp.float32))
    w2_p = jnp.zeros((HID_P, OUT_P), cdt).at[:HID, :OUT].set(w2.astype(cdt))
    b2_p = jnp.zeros((1, OUT_P), jnp.float32).at[0, :OUT].set(b2.astype(jnp.float32))
    return w1_p, b1_p, w2_p, b2_p


@functools.partial(jax.jit, static_argnames=("out_features", "tm"))
def net_sigmoid_forward(x, w1_p, b1_p, w2_p, b2_p, *, out_features, tm=None):
    """x: [B, IN] -> [B, out_features] float32 (forward of Net_Sigmoid)."""
    B, IN = x.shape
    HID_P = w1_p.shape[1]
    OUT_P = w2_p.shape[1]
    cdt = w1_p.dtype

    # torch `x.float()` semantics, then (optionally) downcast to MXU dtype.
    xk = x.astype(jnp.float32).astype(cdt)

    # Batch padded only to a sublane multiple (8); contraction dims stay exact.
    B_P = _round_up(B, 8)
    if B_P != B:
        xk = jnp.zeros((B_P, IN), cdt).at[:B].set(xk)

    if tm is None:
        # >= 2 grid steps whenever the batch allows it (dual-TC v7x); cap the
        # tile at 1024 rows (knee of the measured per-step-overhead curve).
        tm = max(8, min(1024, _round_up(_cdiv(B_P, 2), 8)))
    tm = min(tm, B_P)
    n_steps = _cdiv(B_P, tm)        # final block may be partial (batch dim only)

    itemsize = jnp.dtype(cdt).itemsize
    buf_bytes = (2 * tm * IN * itemsize                       # x stream (2 bufs)
                 + 2 * tm * OUT_P * 4                         # out stream (2 bufs)
                 + 2 * (IN * HID_P + HID_P * OUT_P) * itemsize  # resident weights
                 + 2 * (HID_P + OUT_P) * 4                    # biases
                 + tm * HID_P * 4)                            # f32 hidden interm.
    vmem_limit = int(min(48 << 20, max(32 << 20, 2 * buf_bytes)))

    flops = 2 * B_P * IN * HID_P + 2 * B_P * HID_P * OUT_P
    bytes_accessed = (B_P * IN * itemsize
                      + (IN * HID_P + HID_P * OUT_P) * itemsize
                      + (HID_P + OUT_P) * 4
                      + B_P * OUT_P * 4)

    out_p = pl.pallas_call(
        _mlp_kernel,
        out_shape=jax.ShapeDtypeStruct((B_P, OUT_P), jnp.float32),
        grid=(n_steps,),
        in_specs=[
            pl.BlockSpec((tm, IN), lambda i: (i, 0)),       # streamed; IN = full dim
            pl.BlockSpec((IN, HID_P), lambda i: (0, 0)),    # VMEM-resident weights
            pl.BlockSpec((1, HID_P), lambda i: (0, 0)),
            pl.BlockSpec((HID_P, OUT_P), lambda i: (0, 0)),
            pl.BlockSpec((1, OUT_P), lambda i: (0, 0)),
        ],
        out_specs=pl.BlockSpec((tm, OUT_P), lambda i: (i, 0)),   # lane-dense store
        compiler_params=pltpu.CompilerParams(
            dimension_semantics=("parallel",),
            vmem_limit_bytes=vmem_limit),
        cost_estimate=pl.CostEstimate(
            flops=flops,
            transcendentals=B_P * HID_P,                     # exp inside sigmoid
            bytes_accessed=bytes_accessed),
    )(xk, w1_p, b1_p, w2_p, b2_p)

    return out_p[:B, :out_features]


def init_params(key, input_num, hidden_num, output_num):
    """Deterministic init mimicking nn.Linear default U(-1/sqrt(fan_in), +)."""
    k1, k2, k3, k4 = jax.random.split(key, 4)
    bound1 = 1.0 / (input_num ** 0.5)
    bound2 = 1.0 / (hidden_num ** 0.5)
    # stored as [in, out] (transpose of PyTorch's [out, in])
    w1 = jax.random.uniform(k1, (input_num, hidden_num), jnp.float32, -bound1, bound1)
    b1 = jax.random.uniform(k2, (hidden_num,), jnp.float32, -bound1, bound1)
    w2 = jax.random.uniform(k3, (hidden_num, output_num), jnp.float32, -bound2, bound2)
    b2 = jax.random.uniform(k4, (output_num,), jnp.float32, -bound2, bound2)
    return w1, b1, w2, b2


if __name__ == "__main__":
    # small shapes consistent with the module: batch=8, inputNum=32,
    # hiddenNum=64, outputNum=16
    B, IN, HID, OUT = 8, 32, 64, 16
    key = jax.random.PRNGKey(0)
    kx, kp, kx2 = jax.random.split(key, 3)
    x = jax.random.normal(kx, (B, IN), jnp.float32)
    w1, b1, w2, b2 = init_params(kp, IN, HID, OUT)

    # pure-JAX reference (matches torch: out(sigmoid(fc1(x.float()))))
    y_ref = jax.nn.sigmoid(x @ w1 + b1[None, :]) @ w2 + b2[None, :]

    # Default bf16-MXU path (f32 accumulation, f32 bias/sigmoid).
    params_bf16 = prepare_params(w1, b1, w2, b2, compute_dtype=jnp.bfloat16)
    y = jax.block_until_ready(net_sigmoid_forward(x, *params_bf16, out_features=OUT))
    assert y.shape == (B, OUT), y.shape
    assert jnp.allclose(y, y_ref, atol=5e-2, rtol=5e-2), float(
        jnp.max(jnp.abs(y - y_ref)))

    # f32 path: bit-strict torch-f32-style semantics, tight tolerance.
    params_f32 = prepare_params(w1, b1, w2, b2, compute_dtype=jnp.float32)
    y32 = jax.block_until_ready(net_sigmoid_forward(x, *params_f32, out_features=OUT))
    assert jnp.allclose(y32, y_ref, atol=1e-5, rtol=1e-5), float(
        jnp.max(jnp.abs(y32 - y_ref)))

    # Odd batch: exercises batch padding (100 -> 104) and a partial last block.
    x2 = jax.random.normal(kx2, (100, IN), jnp.float32)
    y2 = jax.block_until_ready(net_sigmoid_forward(x2, *params_bf16, out_features=OUT))
    y2_ref = jax.nn.sigmoid(x2 @ w1 + b1[None, :]) @ w2 + b2[None, :]
    assert y2.shape == (100, OUT), y2.shape
    assert jnp.allclose(y2, y2_ref, atol=5e-2, rtol=5e-2), float(
        jnp.max(jnp.abs(y2 - y2_ref)))

    print("KERNEL_OK")
</pallas_src>

<mosaic_0001>
module attributes {stable_mosaic.version = 11 : i64} {
  func.func @_mlp_kernel(%arg0: i32, %arg1: memref<8x32xbf16, #tpu.memory_space<vmem>>, %arg2: memref<32x128xbf16, #tpu.memory_space<vmem>>, %arg3: memref<1x128xf32, #tpu.memory_space<vmem>>, %arg4: memref<128x128xbf16, #tpu.memory_space<vmem>>, %arg5: memref<1x128xf32, #tpu.memory_space<vmem>>, %arg6: memref<8x128xf32, #tpu.memory_space<vmem>>) attributes {dimension_semantics = [#tpu.dimension_semantics<parallel>], iteration_bounds = array<i64: 1>, scalar_prefetch = 0 : i64, scratch_operands = 0 : i64, tpu.core_type = #tpu.core_type<tc>, window_params = [{transform_indices = @transform_0, window_bounds = array<i64: 8, 32>}, {pipeline_mode = #tpu.pipeline_mode<synchronous>, transform_indices = @transform_1, window_bounds = array<i64: 32, 128>}, {pipeline_mode = #tpu.pipeline_mode<synchronous>, transform_indices = @transform_2, window_bounds = array<i64: 1, 128>}, {pipeline_mode = #tpu.pipeline_mode<synchronous>, transform_indices = @transform_3, window_bounds = array<i64: 128, 128>}, {pipeline_mode = #tpu.pipeline_mode<synchronous>, transform_indices = @transform_4, window_bounds = array<i64: 1, 128>}, {transform_indices = @transform_5, window_bounds = array<i64: 8, 128>}]} {
    %c0 = arith.constant 0 : index
    %c0_0 = arith.constant 0 : index
    %0 = vector.load %arg1[%c0, %c0_0] : memref<8x32xbf16, #tpu.memory_space<vmem>>, vector<8x32xbf16>
    %c0_1 = arith.constant 0 : index
    %c0_2 = arith.constant 0 : index
    %1 = vector.load %arg2[%c0_1, %c0_2] : memref<32x128xbf16, #tpu.memory_space<vmem>>, vector<32x128xbf16>
    %cst = arith.constant dense<0.000000e+00> : vector<8x128xf32>
    %2 = tpu.matmul %0, %1, %cst {dimension_numbers = #tpu.dot_dimension_numbers<[1], [0], [0], [1], [0, 0, 1, 1], [], []>} : vector<8x32xbf16>, vector<32x128xbf16>, vector<8x128xf32> -> vector<8x128xf32>
    %c0_3 = arith.constant 0 : index
    %c0_4 = arith.constant 0 : index
    %3 = vector.load %arg3[%c0_3, %c0_4] : memref<1x128xf32, #tpu.memory_space<vmem>>, vector<1x128xf32>
    %4 = vector.broadcast %3 : vector<1x128xf32> to vector<8x128xf32>
    %5 = arith.addf %2, %4 : vector<8x128xf32>
    %6 = arith.negf %5 : vector<8x128xf32>
    %7 = math.exp %6 : vector<8x128xf32>
    %cst_5 = arith.constant 1.000000e+00 : f32
    %8 = vector.broadcast %cst_5 : f32 to vector<8x128xf32>
    %9 = arith.addf %8, %7 : vector<8x128xf32>
    %10 = arith.divf %8, %9 : vector<8x128xf32>
    %11 = arith.truncf %10 : vector<8x128xf32> to vector<8x128xbf16>
    %c0_6 = arith.constant 0 : index
    %c0_7 = arith.constant 0 : index
    %12 = vector.load %arg4[%c0_6, %c0_7] : memref<128x128xbf16, #tpu.memory_space<vmem>>, vector<128x128xbf16>
    %cst_8 = arith.constant dense<0.000000e+00> : vector<8x128xf32>
    %13 = tpu.matmul %11, %12, %cst_8 {dimension_numbers = #tpu.dot_dimension_numbers<[1], [0], [0], [1], [0, 0, 1, 1], [], []>} : vector<8x128xbf16>, vector<128x128xbf16>, vector<8x128xf32> -> vector<8x128xf32>
    %c0_9 = arith.constant 0 : index
    %c0_10 = arith.constant 0 : index
    %14 = vector.load %arg5[%c0_9, %c0_10] : memref<1x128xf32, #tpu.memory_space<vmem>>, vector<1x128xf32>
    %15 = vector.broadcast %14 : vector<1x128xf32> to vector<8x128xf32>
    %16 = arith.addf %13, %15 : vector<8x128xf32>
    %c0_11 = arith.constant 0 : index
    %c0_12 = arith.constant 0 : index
    %17 = vector.load %arg6[%c0_11, %c0_12] : memref<8x128xf32, #tpu.memory_space<vmem>>, vector<8x128xf32>
    tpu.vector_store %arg6[%c0_11, %c0_12], %16 {strides = array<i32>} : memref<8x128xf32, #tpu.memory_space<vmem>>, vector<8x128xf32>,
    return
  }
  func.func @transform_0(%arg0: i32) -> (i32, i32) {
    %c0_i32 = arith.constant 0 : i32
    %c0_i32_0 = arith.constant 0 : i32
    return %arg0, %c0_i32 : i32, i32
  }
  func.func @transform_1(%arg0: i32) -> (i32, i32) {
    %c0_i32 = arith.constant 0 : i32
    %c0_i32_0 = arith.constant 0 : i32
    %c0_i32_1 = arith.constant 0 : i32
    return %c0_i32, %c0_i32_0 : i32, i32
  }
  func.func @transform_2(%arg0: i32) -> (i32, i32) {
    %c0_i32 = arith.constant 0 : i32
    %c0_i32_0 = arith.constant 0 : i32
    %c0_i32_1 = arith.constant 0 : i32
    return %c0_i32, %c0_i32_0 : i32, i32
  }
  func.func @transform_3(%arg0: i32) -> (i32, i32) {
    %c0_i32 = arith.constant 0 : i32
    %c0_i32_0 = arith.constant 0 : i32
    %c0_i32_1 = arith.constant 0 : i32
    return %c0_i32, %c0_i32_0 : i32, i32
  }
  func.func @transform_4(%arg0: i32) -> (i32, i32) {
    %c0_i32 = arith.constant 0 : i32
    %c0_i32_0 = arith.constant 0 : i32
    %c0_i32_1 = arith.constant 0 : i32
    return %c0_i32, %c0_i32_0 : i32, i32
  }
  func.func @transform_5(%arg0: i32) -> (i32, i32) {
    %c0_i32 = arith.constant 0 : i32
    %c0_i32_0 = arith.constant 0 : i32
    return %arg0, %c0_i32 : i32, i32
  }
}

</mosaic_0001>

<bundles_post_ra>
// kernel: net_sigmoid_forward.1
= control target key start
LH: loop header
LB: loop body
LE: loop exit
PB: predicated region body
PF: predicated region fallthrough
CT: control target
= control target key end

     0   :  { %10 = vsyncpa [#allocation3], 0  ;;  %s406_s0 = inlined_call_operand.vmem [shape: bf16[8,32], index: 0, kind: input, shape index: {}]   ;;  %s407_s1 = inlined_call_operand.hbm [shape: bf16[32,128], index: 1, kind: input, shape index: {}]   ;;  %s408_s2 = inlined_call_operand.vmem [shape: f32[1,128], index: 2, kind: input, shape index: {}]   ;;  %s409_s3 = inlined_call_operand.hbm [shape: bf16[128,128], index: 3, kind: input, shape index: {}]   ;;  %s410_s4 = inlined_call_operand.vmem [shape: f32[1,128], index: 4, kind: input, shape index: {}]   ;;  %s411_s5 = inlined_call_operand.hbm [shape: f32[8,128], index: 5, kind: output, shape index: {}]  }
   0x1   :  { %11 = vsyncpa [#allocation6], 0 }
   0x2   :  { %12 = vsyncpa [#allocation4], 0  ;;  %s19_s20 = sshll.u32 %s407_s1, 4  ;;  %s353_s21 = smov [#allocation2]   ;;  %s20_s20 = int_to_ptr.hbm [resolvable:$true] %s19_s20 }
   0x3   :  { %s21_s22 = sshll.u32 %s353_s21, 4  ;;  %s34_s25 = sshll.u32 %s409_s3, 4  ;;  %s22_s22 = int_to_ptr.vmem [resolvable:$true] %s21_s22  ;;  %s35_s25 = int_to_ptr.hbm [resolvable:$true] %s34_s25 }
   0x4   :  { %s354_s26 = smov 64   ;;  %s355_s27 = smov 4  }
   0x5   :  { %27 = dma.hbm_to_vmem [thread:$0]  %s20_s20, 256, %s22_s22, [#allocation3], %s354_s26, %s354_s26, %s355_s27  }
   0x6   :  { %s356_s28 = smov [#allocation5]  }
   0x7   :  { %s36_s29 = sshll.u32 %s356_s28, 4  ;;  %s37_s29 = int_to_ptr.vmem [resolvable:$true] %s36_s29 }
   0x8   :  { %42 = dma.hbm_to_vmem [thread:$0]  %s35_s25, 1024, %s37_s29, [#allocation6], %s354_s26, %s354_s26, %s355_s27  }
   0x9   :  { %347 = dma.done.wait [#allocation3], 256  }
   0xa   :  { %348 = vsyncadd [#allocation3], 4294967040 }
   0xb   :  { %349 = dma.done.wait [#allocation6], 1024  }
   0xc   :  { %350 = vsyncadd [#allocation6], 4294966272  ;;  %v255_v0 = vld [vmem:[#allocation2 + $0x8] sm:$0xff]  ;;  %v254_v1 = vld [vmem:[#allocation2] sm:$0xff]  ;;  %vm75_vm0 = vcmask 261120   ;;  %s357_s7 = smov [#allocation7]  }
   0xd   :  { %85 = vmatpush.bf16.msra.mxu0 %v255_v0  ;;  %v54_v2 = vld [vmem:[%s406_s0] sm:$0xf]  ;;  %v263_v3 = vld [vmem:[#allocation5 + $0x38] sm:$0xff]  ;;  %v261_v5 = vld [vmem:[#allocation5 + $0x28] sm:$0xff]  ;;  %s199_s8 = sshll.u32 %s357_s7, 4  ;;  %s201_s11 = sshll.u32 %s411_s5, 4  ;;  %s200_s8 = int_to_ptr.vmem [resolvable:$true] %s199_s8  ;;  %s202_s11 = int_to_ptr.hbm [resolvable:$true] %s201_s11 }
   0xe   :  { %180 = vmatpush.bf16.msra.mxu1 %v263_v3  ;;  %v262_v4 = vld [vmem:[#allocation5 + $0x30] sm:$0xff]  ;;  %v260_v6 = vld [vmem:[#allocation5 + $0x20] sm:$0xff]  ;;  %v259_v7 = vld [vmem:[#allocation5 + $0x18] sm:$0xff] }
   0xf   :  { %v258_v8 = vld [vmem:[#allocation5 + $0x10] sm:$0xff]  ;;  %v257_v9 = vld [vmem:[#allocation5 + $0x8] sm:$0xff]  ;;  %v256_v10 = vld [vmem:[#allocation5] sm:$0xff] }
  0x10   :  { %v269_v11 = vld [vmem:[%s408_s2] ss:$0 sm:$0xff] }
  0x11   :  { %86 = vmatpush.bf16.msra.mxu0 %v254_v1  ;;  %v270_v29 = vld [vmem:[%s410_s4] ss:$0 sm:$0xff] }
  0x12   :  { %181 = vmatpush.bf16.msra.mxu1 %v262_v4 }
  0x14   :  { %220 = vmatmul.msk.bf16.vlgmr.msra.gmra.mxu0 %vm75_vm0, %v54_v2 }
  0x16   :  { %182 = vmatpush.bf16.msra.mxu1 %v261_v5 }
  0x1a   :  { %183 = vmatpush.bf16.msra.mxu1 %v260_v6 }
  0x1e   :  { %184 = vmatpush.bf16.msra.mxu1 %v259_v7 }
  0x22   :  { %185 = vmatpush.bf16.msra.mxu1 %v258_v8 }
  0x26   :  { %186 = vmatpush.bf16.msra.mxu1 %v257_v9 }
  0x2a   :  { %187 = vmatpush.bf16.msra.mxu1 %v256_v10 }
  0x91   :  { %v88_v12 = vpop.f32.mrf.mxu0 }
  0x92   :  { %v89_v13 = vadd.f32 %v269_v11, %v88_v12 }
  0x94   :  { %v221_v14 = vmul.f32 -1.442695, %v89_v13 }
  0x96   :  { %271 = vpow2.f32 %v221_v14 }
  0x99   :  { %v90_v15 = vpop.f32.mrf.mxu0 }
  0x9c   :  { %v272_v16 = vpop.eup %271 }
  0x9d   :  { %v95_v17 = vadd.f32 1.0, %v272_v16 }
  0x9f   :  { %273 = vrcp.f32 %v95_v17  ;;  %v107_v21 = vand.u32 2147483648, %v95_v17  ;;  %v105_v23 = vand.u32 2147483647, %v95_v17  ;;  %vm101_vm2 = vweird.f32 %v95_v17 }
  0xa1   :  { %v108_v25 = vor.u32 1.1754944e-38, %v107_v21  ;;  %vm106_vm4 = vcmp.eq.f32.partialorder %v105_v23, 8.507059e+37 }
  0xa5   :  { %v274_v18 = vpop.eup %273 }
  0xa6   :  { %v97_v19 = vmul.f32 %v274_v18, %v95_v17  ;;  %vm102_vm1 = vweird.f32 %v274_v18 }
  0xa7   :  { %vm103_vm3 = vmor %vm101_vm2, %vm102_vm1 }
  0xa8   :  { %v98_v20 = vsub.f32 1.0, %v97_v19 }
  0xaa   :  { %v99_v22 = vmul.f32 %v274_v18, %v98_v20 }
  0xac   :  { %v100_v24 = vadd.f32 %v274_v18, %v99_v22 }
  0xae   :  { %v104_v26 = vsel %vm103_vm3, %v274_v18, %v100_v24 }
  0xaf   :  { %v109_v27 = vsel %vm106_vm4, %v108_v25, %v104_v26 }
  0xb0   :  { %v111_v28 = vpack.c.bf16 %v109_v27, %v109_v27 }
  0xb2   :  { %188 = vmatmul.bf16.vlgmr.msra.gmra.mxu1 %v111_v28 }
 0x12f   :  { %v189_v30 = vpop.f32.mrf.mxu1 }
 0x130   :  { %v190_v31 = vadd.f32 %v270_v29, %v189_v30 }
 0x132   :  { %193 = vst [vmem:[#allocation7] sm:$0xff] %v190_v31 }
 0x133   :  { %204 = dma.vmem_to_hbm [thread:$0]  %s200_s8, 128, %s202_s11, [#allocation4]  }
 0x137   :  { %v191_v32 = vpop.f32.mrf.mxu1 }
 0x138   :  { %351 = dma.done.wait [#allocation4], 128  }
 0x139   :  { %352 = vsyncadd [#allocation4], 4294967168 }
 0x13a   :  { %209 = vsyncpa [#allocation3], 1 }
 0x13b   :  { %210 = vsyncpa [#allocation6], 1 }
 0x13c   :  { %211 = vsyncpa [#allocation4], 1 }

</bundles_post_ra>
